<compile_context>
chip_gen: v7x
topology: tpu7x:2x2x1
jax: 0.10.0
libtpu: 0.0.40
codegen_flags: <defaults>
</compile_context>

<pallas_src>
import math
from functools import partial

import jax
import jax.numpy as jnp
from jax.experimental import pallas as pl
from jax.experimental.pallas import tpu as pltpu


def _round_up(x, m):
    return (x + m - 1) // m * m


# -----------------------------------------------------------------------------
# Pallas kernel 1: tiled  y = act(x @ W + b)   (W stored pre-transposed, bf16)
# -----------------------------------------------------------------------------
def _linear_kernel(x_ref, w_ref, b_ref, o_ref, acc_ref, *, nk, act):
    k = pl.program_id(2)

    @pl.when(k == 0)
    def _():
        acc_ref[...] = jnp.zeros_like(acc_ref)

    acc_ref[...] += jnp.dot(x_ref[...], w_ref[...],
                            preferred_element_type=jnp.float32)

    @pl.when(k == nk - 1)
    def _():
        r = acc_ref[...] + b_ref[...]
        if act == "leaky_relu":
            r = jnp.where(r >= 0, r, 0.01 * r)
        elif act == "relu":
            r = jnp.maximum(r, 0.0)
        o_ref[...] = r.astype(o_ref.dtype)


def _pick_tiles(M, Kp, Np):
    if M <= 256:
        tm = min(256, max(16, _round_up(M, 16)))
    else:
        tm = 256
    if Kp % 512 == 0:
        tk = 512
    elif Kp % 256 == 0:
        tk = 256
    else:
        tk = 128
    if Np >= 1024 and Np % 512 == 0:
        tn = 512
    elif Np >= 512 and Np % 256 == 0:
        tn = 256          # keeps >= 2 blocks on the j axis (v7x 2-TC friendly)
    else:
        tn = 128
    return tm, tk, tn


def pallas_linear(x, p, out_dtype=jnp.float32):
    """x: (..., din).  p holds pre-padded bf16 weight (Kp, Np) and f32 bias."""
    lead = x.shape[:-1]
    din, dout, act = p["din"], p["dout"], p["act"]
    Kp, Np = p["w"].shape
    x2 = x.reshape(-1, din)
    M = x2.shape[0]
    tm, tk, tn = _pick_tiles(M, Kp, Np)
    Mp = _round_up(M, tm)

    xb = x2.astype(jnp.bfloat16)
    if Mp != M or Kp != din:
        xb = jnp.pad(xb, ((0, Mp - M), (0, Kp - din)))
    nk = Kp // tk

    out = pl.pallas_call(
        partial(_linear_kernel, nk=nk, act=act),
        out_shape=jax.ShapeDtypeStruct((Mp, Np), out_dtype),
        grid_spec=pltpu.PrefetchScalarGridSpec(
            num_scalar_prefetch=0,
            grid=(Mp // tm, Np // tn, nk),
            in_specs=[
                pl.BlockSpec((tm, tk), lambda i, j, k: (i, k)),
                pl.BlockSpec((tk, tn), lambda i, j, k: (k, j)),
                pl.BlockSpec((1, tn), lambda i, j, k: (0, j)),
            ],
            out_specs=pl.BlockSpec((tm, tn), lambda i, j, k: (i, j)),
            scratch_shapes=[pltpu.VMEM((tm, tn), jnp.float32)],
        ),
        compiler_params=pltpu.CompilerParams(
            dimension_semantics=("parallel", "parallel", "arbitrary")),
    )(xb, p["w"], p["b"])
    if Mp != M or Np != dout:
        out = out[:M, :dout]
    return out.reshape(*lead, dout)


# -----------------------------------------------------------------------------
# Pallas kernel 2: "left" linear  y[b] = act(W @ x[b] + b[:, None])
# (used for the transposed spatial-mapper MLPs -> no activation swapaxes)
# -----------------------------------------------------------------------------
def _left_linear_kernel(w_ref, x_ref, b_ref, o_ref, acc_ref, *, nk, act):
    k = pl.program_id(3)

    @pl.when(k == 0)
    def _():
        acc_ref[...] = jnp.zeros_like(acc_ref)

    acc_ref[...] += jnp.dot(w_ref[...], x_ref[0],
                            preferred_element_type=jnp.float32)

    @pl.when(k == nk - 1)
    def _():
        r = acc_ref[...] + b_ref[...]          # (tm, tn) + (tm, 1)
        if act == "leaky_relu":
            r = jnp.where(r >= 0, r, 0.01 * r)
        elif act == "relu":
            r = jnp.maximum(r, 0.0)
        o_ref[0] = r.astype(o_ref.dtype)


def pallas_left_linear(x, p, out_dtype=jnp.float32):
    """x: (B, din, J) -> (B, dout, J) = act(W @ x[b] + b)."""
    B, din, J = x.shape
    dout = p["dout"]
    Ip, Kp = p["w"].shape
    Jp = _round_up(J, 128)
    xb = x.astype(jnp.bfloat16)
    if Kp != din or Jp != J:
        xb = jnp.pad(xb, ((0, 0), (0, Kp - din), (0, Jp - J)))
    tm = 256 if Ip % 256 == 0 else 128
    tk = 512 if Kp % 512 == 0 else (256 if Kp % 256 == 0 else 128)
    tn = 256 if Jp % 256 == 0 else 128
    nk = Kp // tk

    out = pl.pallas_call(
        partial(_left_linear_kernel, nk=nk, act=p["act"]),
        out_shape=jax.ShapeDtypeStruct((B, Ip, Jp), out_dtype),
        grid_spec=pltpu.PrefetchScalarGridSpec(
            num_scalar_prefetch=0,
            grid=(B, Ip // tm, Jp // tn, nk),
            in_specs=[
                pl.BlockSpec((tm, tk), lambda b, i, j, k: (i, k)),
                pl.BlockSpec((1, tk, tn), lambda b, i, j, k: (b, k, j)),
                pl.BlockSpec((tm, 1), lambda b, i, j, k: (i, 0)),
            ],
            out_specs=pl.BlockSpec((1, tm, tn), lambda b, i, j, k: (b, i, j)),
            scratch_shapes=[pltpu.VMEM((tm, tn), jnp.float32)],
        ),
        compiler_params=pltpu.CompilerParams(
            dimension_semantics=("parallel", "parallel", "parallel", "arbitrary")),
    )(p["w"], xb, p["b"])
    if Ip != dout or Jp != J:
        out = out[:, :dout, :J]
    return out


# -----------------------------------------------------------------------------
# Pallas kernel 3: fused multi-head cross attention core.
# Grid = (B, nhead); heads are 128-lane slices of the (B, L, 512) projections,
# so no head split/merge transposes are ever materialised.
# -----------------------------------------------------------------------------
def _mha_kernel(q_ref, k_ref, v_ref, o_ref, *, scale):
    q = q_ref[0]                                  # (Lqp, dh) bf16
    k = k_ref[0]                                  # (Lk,  dh) bf16
    v = v_ref[0]                                  # (Lk,  dh) bf16
    s = jax.lax.dot_general(q, k, (((1,), (1,)), ((), ())),
                            preferred_element_type=jnp.float32) * scale
    m = jnp.max(s, axis=-1, keepdims=True)
    p = jnp.exp(s - m)
    l = jnp.sum(p, axis=-1, keepdims=True)
    o = jnp.dot(p.astype(jnp.bfloat16), v, preferred_element_type=jnp.float32)
    o_ref[0] = (o * pl.reciprocal(l, approx=True)).astype(o_ref.dtype)


def pallas_mha(q, kv, *, nhead, dh, scale, lq):
    """q: (B, Lqp, D) bf16; kv: (B, Lk, 2*D) bf16 with [K | V] along the last
    dim.  Returns concat-of-heads output (B, lq, D) in f32."""
    B, Lqp, D = q.shape
    Lk = kv.shape[1]
    out = pl.pallas_call(
        partial(_mha_kernel, scale=scale),
        out_shape=jax.ShapeDtypeStruct((B, Lqp, D), jnp.float32),
        grid_spec=pltpu.PrefetchScalarGridSpec(
            num_scalar_prefetch=0,
            grid=(B, nhead),
            in_specs=[
                pl.BlockSpec((1, Lqp, dh), lambda b, h: (b, 0, h)),
                pl.BlockSpec((1, Lk, dh), lambda b, h: (b, 0, h)),
                pl.BlockSpec((1, Lk, dh), lambda b, h: (b, 0, h + nhead)),
            ],
            out_specs=pl.BlockSpec((1, Lqp, dh), lambda b, h: (b, 0, h)),
        ),
        compiler_params=pltpu.CompilerParams(
            dimension_semantics=("parallel", "parallel")),
    )(q, kv, kv)
    return out[:, :lq, :]


# -----------------------------------------------------------------------------
# Plain-JAX glue (tiny ops)
# -----------------------------------------------------------------------------
def layernorm(x, eps=1e-5):
    # matches nn.LayerNorm(512, elementwise_affine=False)
    mu = jnp.mean(x, axis=-1, keepdims=True)
    var = jnp.mean((x - mu) ** 2, axis=-1, keepdims=True)
    return (x - mu) * jax.lax.rsqrt(var + eps)


# -----------------------------------------------------------------------------
# Deterministic parameter construction (weights pre-padded / pre-cast once)
# -----------------------------------------------------------------------------
def init_linear(key, din, dout):
    k1, k2 = jax.random.split(key)
    bound = 1.0 / math.sqrt(din)
    W = jax.random.uniform(k1, (dout, din), jnp.float32, -bound, bound)
    b = jax.random.uniform(k2, (dout,), jnp.float32, -bound, bound)
    return W, b


def prep_linear(W, b, act=None):
    dout, din = W.shape
    Kp, Np = _round_up(din, 128), _round_up(dout, 128)
    w = jnp.pad(W.T, ((0, Kp - din), (0, Np - dout))).astype(jnp.bfloat16)
    bb = jnp.pad(b, (0, Np - dout)).astype(jnp.float32)[None, :]
    return {"w": w, "b": bb, "din": din, "dout": dout, "act": act}


def prep_left_linear(W, b, act=None):
    dout, din = W.shape
    Kp, Ip = _round_up(din, 128), _round_up(dout, 128)
    w = jnp.pad(W, ((0, Ip - dout), (0, Kp - din))).astype(jnp.bfloat16)
    bb = jnp.pad(b, (0, Ip - dout)).astype(jnp.float32)[:, None]
    return {"w": w, "b": bb, "din": din, "dout": dout, "act": act}


def make_mlp(key, sizes, final_act=None):
    keys = jax.random.split(key, len(sizes) - 1)
    layers = []
    for i in range(len(sizes) - 1):
        W, b = init_linear(keys[i], sizes[i], sizes[i + 1])
        act = "leaky_relu" if i < len(sizes) - 2 else final_act
        layers.append(prep_linear(W, b, act))
    return layers


def make_left_mlp(key, sizes, final_act="leaky_relu"):
    keys = jax.random.split(key, len(sizes) - 1)
    layers = []
    for i in range(len(sizes) - 1):
        W, b = init_linear(keys[i], sizes[i], sizes[i + 1])
        act = "leaky_relu" if i < len(sizes) - 2 else final_act
        layers.append(prep_left_linear(W, b, act))
    return layers


def apply_mlp(x, layers, out_dtype=jnp.float32):
    for i, p in enumerate(layers):
        last = i == len(layers) - 1
        x = pallas_linear(x, p, out_dtype=out_dtype if last else jnp.bfloat16)
    return x


def apply_left_mlp(x, layers, out_dtype=jnp.float32):
    for i, p in enumerate(layers):
        last = i == len(layers) - 1
        x = pallas_left_linear(x, p, out_dtype=out_dtype if last else jnp.bfloat16)
    return x


def init_query_spatial_fused(key):
    """Fuses mapper_query_spatial_{coarse,mid,fine} (shared x_query input)
    into one MLP: layer1 stacked along N, layer2 block-diagonal -> exact."""
    ks = jax.random.split(key, 6)
    W1c, b1c = init_linear(ks[0], 64, 64)
    W2c, b2c = init_linear(ks[1], 64, 3)
    W1m, b1m = init_linear(ks[2], 64, 64)
    W2m, b2m = init_linear(ks[3], 64, 3)
    W1f, b1f = init_linear(ks[4], 64, 64)
    W2f, b2f = init_linear(ks[5], 64, 7)
    W1 = jnp.concatenate([W1c, W1m, W1f], axis=0)          # (192, 64)
    b1 = jnp.concatenate([b1c, b1m, b1f])
    W2 = jnp.zeros((13, 192), jnp.float32)
    W2 = W2.at[0:3, 0:64].set(W2c).at[3:6, 64:128].set(W2m).at[6:13, 128:192].set(W2f)
    b2 = jnp.concatenate([b2c, b2m, b2f])
    return [prep_linear(W1, b1, "leaky_relu"), prep_linear(W2, b2, None)]


def init_cross_att(key, d=512, dff=1024):
    ks = jax.random.split(key, 6)
    Wq, bq = init_linear(ks[0], d, d)
    Wk, bk = init_linear(ks[1], d, d)
    Wv, bv = init_linear(ks[2], d, d)
    Wo, bo = init_linear(ks[3], d, d)
    W1, b1 = init_linear(ks[4], d, dff)
    W2, b2 = init_linear(ks[5], dff, d)
    return {
        "q": prep_linear(Wq, bq),
        "kv": prep_linear(jnp.concatenate([Wk, Wv], axis=0),   # fused K|V proj
                          jnp.concatenate([bk, bv]), None),
        "o": prep_linear(Wo, bo),
        "ffn1": prep_linear(W1, b1, "relu"),
        "ffn2": prep_linear(W2, b2, None),
    }


def init_net_params(key, mlp_layer=2):
    ks = jax.random.split(key, 24)
    P = {}
    P["mapper_base_spatial"] = make_mlp(ks[0], [64, 64, 1])
    P["mapper_base_channel"] = make_mlp(ks[1], [1024, 1024, 512])
    P["mapper_query_spatial_fused"] = init_query_spatial_fused(ks[2])
    P["mapper_query_channel_coarse"] = make_mlp(ks[3], [1024, 1024, 512])
    P["mapper_query_channel_mid"] = make_mlp(ks[4], [1024, 1024, 512])
    P["mapper_query_channel_fine"] = make_mlp(ks[5], [1024, 1024, 512])
    P["mapper_coarse_channel"] = make_mlp(ks[6], [512, 512], final_act="leaky_relu")
    P["mapper_mid_channel"] = make_mlp(ks[7], [256, 512], final_act="leaky_relu")
    P["mapper_fine_channel"] = make_mlp(ks[8], [128, 256, 512], final_act="leaky_relu")
    # transposed ("left") form of the spatial mappers:
    P["mapper_coarse_to_mid_spatial"] = make_left_mlp(ks[9], [256, 512, 1024])
    P["mapper_mid_to_fine_spatial"] = make_left_mlp(ks[10], [1024, 2048, 4096])
    P["cross_att_coarse"] = init_cross_att(ks[11])
    P["cross_att_mid"] = init_cross_att(ks[12])
    P["cross_att_fine"] = init_cross_att(ks[13])
    # PosePredictor
    Ws, bs = init_linear(ks[14], 64, 1)
    Wc, bc = init_linear(ks[15], 1024, 12)
    P["pp_spatial"] = prep_linear(Ws, bs)
    P["pp_channel"] = prep_linear(Wc, bc)
    # Net buffers
    P["w_avg"] = jax.random.normal(ks[16], (512,), jnp.float32) * 0.01
    P["pose_fix"] = jnp.array(
        [0, 0, 0, 1, 4.2647, 0, 0.5, 0, 4.2647, 0.5, 0, 0, 1], jnp.float32
    ).reshape(1, -1)
    return P


# -----------------------------------------------------------------------------
# CrossAttention_without_norm3.forward (dropout = eval-mode identity)
# -----------------------------------------------------------------------------
def cross_attention_without_norm3(p, tgt, memory, nhead=4):
    B, Lq, D = tgt.shape
    dh = D // nhead
    Lqp = 16                                    # bf16 sublane-aligned query pad
    scale = 1.0 / math.sqrt(dh)

    q = pallas_linear(tgt, p["q"], out_dtype=jnp.bfloat16)           # (B,Lq,512)
    q = jnp.pad(q, ((0, 0), (0, Lqp - Lq), (0, 0)))
    kv = pallas_linear(memory, p["kv"], out_dtype=jnp.bfloat16)      # (B,Lk,1024)
    attn = pallas_mha(q, kv, nhead=nhead, dh=dh, scale=scale, lq=Lq)  # (B,Lq,512)

    tgt2 = pallas_linear(attn, p["o"])
    t = tgt + tgt2
    t = layernorm(t)                            # norm2 (elementwise_affine=False)
    ff = pallas_linear(t, p["ffn1"], out_dtype=jnp.bfloat16)          # linear1+relu
    ff = pallas_linear(ff, p["ffn2"])                                 # linear2
    return t + ff


# -----------------------------------------------------------------------------
# SwinEncoder.forward (stage = 3 / Inference, full coarse+mid+fine path)
# -----------------------------------------------------------------------------
def swin_encoder_forward(P, x_base, x_query, x_coarse, x_mid, x_fine):
    B = x_base.shape[0]
    # base ws
    ws_base_max = jnp.max(x_base, axis=2)[:, None, :]                  # (B,1,1024)
    ws_base_linear = apply_mlp(x_base, P["mapper_base_spatial"])       # (B,1024,1)
    ws_base = apply_mlp(jnp.swapaxes(ws_base_linear, 1, 2) + ws_base_max,
                        P["mapper_base_channel"])                      # (B,1,512)
    ws_base = jnp.tile(ws_base, (1, 14, 1))                            # (B,14,512)

    # query ws (spatial mappers fused into one block-diagonal MLP)
    ws_query_max = jnp.max(x_query, axis=2)[:, None, :]                # (B,1,1024)
    wql = apply_mlp(x_query, P["mapper_query_spatial_fused"])          # (B,1024,13)
    q_in_c = jnp.swapaxes(wql[..., 0:3], 1, 2) + ws_query_max
    q_in_m = jnp.swapaxes(wql[..., 3:6], 1, 2) + ws_query_max
    q_in_f = jnp.swapaxes(wql[..., 6:13], 1, 2) + ws_query_max
    ws_query_coarse = apply_mlp(q_in_c, P["mapper_query_channel_coarse"])  # (B,3,512)
    ws_query_mid = apply_mlp(q_in_m, P["mapper_query_channel_mid"])        # (B,3,512)
    ws_query_fine = apply_mlp(q_in_f, P["mapper_query_channel_fine"])      # (B,7,512)

    # key/value pyramids (spatial mappers in transposed/left form -> no swaps)
    kv_coarse = apply_mlp(x_coarse, P["mapper_coarse_channel"],
                          out_dtype=jnp.bfloat16)                       # (B,256,512)
    kv_mid = (apply_mlp(x_mid, P["mapper_mid_channel"], out_dtype=jnp.bfloat16)
              + apply_left_mlp(kv_coarse, P["mapper_coarse_to_mid_spatial"],
                               out_dtype=jnp.bfloat16))                 # (B,1024,512)
    kv_fine = (apply_mlp(x_fine, P["mapper_fine_channel"], out_dtype=jnp.bfloat16)
               + apply_left_mlp(kv_mid, P["mapper_mid_to_fine_spatial"],
                                out_dtype=jnp.bfloat16))                # (B,4096,512)

    # cross attentions
    ws_coarse = cross_attention_without_norm3(P["cross_att_coarse"], ws_query_coarse, kv_coarse)
    ws_mid = cross_attention_without_norm3(P["cross_att_mid"], ws_query_mid, kv_mid)
    ws_fine = cross_attention_without_norm3(P["cross_att_fine"], ws_query_fine, kv_fine)

    zero = jnp.zeros((B, 1, 512), jnp.float32)
    ws_delta = jnp.concatenate([zero, ws_coarse, ws_mid, ws_fine], axis=1)  # (B,14,512)
    ws = ws_base + ws_delta
    return ws, ws_base, x_query


# -----------------------------------------------------------------------------
# Net.forward
# -----------------------------------------------------------------------------
def net_forward(P, x, x_base, x_query, x_coarse, x_mid, x_fine,
                label=None, use_pred_pose=True, return_latents=True):
    B = x.shape[0]
    # TODO(synk): the Swin backbone `build_model(config)` is an external module;
    # its five feature outputs are taken as inputs here instead of being computed from x.
    rec_ws, _, x_query = swin_encoder_forward(P, x_base, x_query, x_coarse, x_mid, x_fine)
    # start_from_latent_avg
    rec_ws = rec_ws + P["w_avg"][None, None, :]

    # PosePredictor
    pp = pallas_linear(x_query, P["pp_spatial"])               # (B,1024,1)
    pp = pallas_linear(jnp.swapaxes(pp, 1, 2), P["pp_channel"])  # (B,1,12)
    pred_pose = pp[:, 0, :]                                    # squeeze(1) -> (B,12)
    pred_pose = jnp.concatenate(
        [pred_pose, jnp.tile(P["pose_fix"], (B, 1))], axis=1)  # (B,25)
    if use_pred_pose:
        label = pred_pose

    # TODO(synk): decoder.synthesis (EG3D TriPlaneGenerator) has no Pallas
    # equivalent here; rec_img outputs ('image', 'image_depth', ...) are omitted.
    out = {"pred_pose": pred_pose}
    if return_latents:
        out["rec_ws"] = rec_ws
    out["label_used"] = label
    return out


# -----------------------------------------------------------------------------
if __name__ == "__main__":
    B = 2
    key = jax.random.PRNGKey(0)
    k = jax.random.split(key, 6)
    # image input (NCHW) — consumed only by the (external) Swin backbone.
    x = jax.random.normal(k[0], (B, 3, 16, 16), jnp.float32)
    # Swin backbone features, shapes dictated by the encoder's Linear layers:
    x_base = jax.random.normal(k[1], (B, 1024, 64), jnp.float32)
    x_query = jax.random.normal(k[2], (B, 1024, 64), jnp.float32)
    x_coarse = jax.random.normal(k[3], (B, 256, 512), jnp.float32)
    x_mid = jax.random.normal(k[4], (B, 1024, 256), jnp.float32)
    x_fine = jax.random.normal(k[5], (B, 4096, 128), jnp.float32)

    params = init_net_params(jax.random.PRNGKey(1), mlp_layer=2)

    out = net_forward(params, x, x_base, x_query, x_coarse, x_mid, x_fine,
                      label=None, use_pred_pose=True, return_latents=True)
    jax.block_until_ready(out["rec_ws"])
    jax.block_until_ready(out["pred_pose"])

    assert out["rec_ws"].shape == (B, 14, 512)
    assert out["pred_pose"].shape == (B, 25)
    assert bool(jnp.all(jnp.isfinite(out["rec_ws"]))) and bool(jnp.all(jnp.isfinite(out["pred_pose"])))
    print("KERNEL_OK")
</pallas_src>

<mosaic_0001>
module attributes {stable_mosaic.version = 11 : i64} {
  func.func @_linear_kernel(%arg0: i32, %arg1: i32, %arg2: i32, %arg3: memref<256x128xbf16, #tpu.memory_space<vmem>>, %arg4: memref<128x128xbf16, #tpu.memory_space<vmem>>, %arg5: memref<1x128xf32, #tpu.memory_space<vmem>>, %arg6: memref<256x128xbf16, #tpu.memory_space<vmem>>, %arg7: memref<256x128xf32, #tpu.memory_space<vmem>>) attributes {dimension_semantics = [#tpu.dimension_semantics<parallel>, #tpu.dimension_semantics<parallel>, #tpu.dimension_semantics<arbitrary>], iteration_bounds = array<i64: 8, 1, 1>, scalar_prefetch = 0 : i64, scratch_operands = 1 : i64, tpu.core_type = #tpu.core_type<tc>, window_params = [{transform_indices = @transform_0, window_bounds = array<i64: 256, 128>}, {transform_indices = @transform_1, window_bounds = array<i64: 128, 128>}, {transform_indices = @transform_2, window_bounds = array<i64: 1, 128>}, {transform_indices = @transform_3, window_bounds = array<i64: 256, 128>}]} {
    %c0_i32 = arith.constant 0 : i32
    %0 = arith.cmpi eq, %arg2, %c0_i32 : i32
    %1 = arith.extui %0 : i1 to i32
    %c0_i32_0 = arith.constant 0 : i32
    %2 = arith.cmpi ne, %1, %c0_i32_0 : i32
    scf.if %2 {
      %cst_10 = arith.constant 0.000000e+00 : f32
      %12 = vector.broadcast %cst_10 : f32 to vector<256x128xf32>
      %c0_11 = arith.constant 0 : index
      %c0_12 = arith.constant 0 : index
      %13 = vector.load %arg7[%c0_11, %c0_12] : memref<256x128xf32, #tpu.memory_space<vmem>>, vector<256x128xf32>
      tpu.vector_store %arg7[%c0_11, %c0_12], %12 {strides = array<i32>} : memref<256x128xf32, #tpu.memory_space<vmem>>, vector<256x128xf32>,
    } else {
    }
    %c0 = arith.constant 0 : index
    %c0_1 = arith.constant 0 : index
    %3 = vector.load %arg7[%c0, %c0_1] : memref<256x128xf32, #tpu.memory_space<vmem>>, vector<256x128xf32>
    %c0_2 = arith.constant 0 : index
    %c0_3 = arith.constant 0 : index
    %4 = vector.load %arg3[%c0_2, %c0_3] : memref<256x128xbf16, #tpu.memory_space<vmem>>, vector<256x128xbf16>
    %c0_4 = arith.constant 0 : index
    %c0_5 = arith.constant 0 : index
    %5 = vector.load %arg4[%c0_4, %c0_5] : memref<128x128xbf16, #tpu.memory_space<vmem>>, vector<128x128xbf16>
    %cst = arith.constant dense<0.000000e+00> : vector<256x128xf32>
    %6 = tpu.matmul %4, %5, %cst {dimension_numbers = #tpu.dot_dimension_numbers<[1], [0], [0], [1], [0, 0, 1, 1], [], []>} : vector<256x128xbf16>, vector<128x128xbf16>, vector<256x128xf32> -> vector<256x128xf32>
    %7 = arith.addf %3, %6 : vector<256x128xf32>
    %c0_6 = arith.constant 0 : index
    %c0_7 = arith.constant 0 : index
    %8 = vector.load %arg7[%c0_6, %c0_7] : memref<256x128xf32, #tpu.memory_space<vmem>>, vector<256x128xf32>
    tpu.vector_store %arg7[%c0_6, %c0_7], %7 {strides = array<i32>} : memref<256x128xf32, #tpu.memory_space<vmem>>, vector<256x128xf32>,
    %c0_i32_8 = arith.constant 0 : i32
    %9 = arith.cmpi eq, %arg2, %c0_i32_8 : i32
    %10 = arith.extui %9 : i1 to i32
    %c0_i32_9 = arith.constant 0 : i32
    %11 = arith.cmpi ne, %10, %c0_i32_9 : i32
    scf.if %11 {
      %c0_10 = arith.constant 0 : index
      %c0_11 = arith.constant 0 : index
      %12 = vector.load %arg7[%c0_10, %c0_11] : memref<256x128xf32, #tpu.memory_space<vmem>>, vector<256x128xf32>
      %c0_12 = arith.constant 0 : index
      %c0_13 = arith.constant 0 : index
      %13 = vector.load %arg5[%c0_12, %c0_13] : memref<1x128xf32, #tpu.memory_space<vmem>>, vector<1x128xf32>
      %14 = vector.broadcast %13 : vector<1x128xf32> to vector<256x128xf32>
      %15 = arith.addf %12, %14 : vector<256x128xf32>
      %cst_14 = arith.constant 0.000000e+00 : f32
      %16 = vector.broadcast %cst_14 : f32 to vector<256x128xf32>
      %17 = arith.cmpf oge, %15, %16 : vector<256x128xf32>
      %cst_15 = arith.constant 0.00999999977 : f32
      %18 = vector.broadcast %cst_15 : f32 to vector<256x128xf32>
      %19 = arith.mulf %18, %15 : vector<256x128xf32>
      %20 = arith.select %17, %15, %19 : vector<256x128xi1>, vector<256x128xf32>
      %21 = arith.truncf %20 : vector<256x128xf32> to vector<256x128xbf16>
      %c0_16 = arith.constant 0 : index
      %c0_17 = arith.constant 0 : index
      %22 = vector.load %arg6[%c0_16, %c0_17] : memref<256x128xbf16, #tpu.memory_space<vmem>>, vector<256x128xbf16>
      tpu.vector_store %arg6[%c0_16, %c0_17], %21 {strides = array<i32>} : memref<256x128xbf16, #tpu.memory_space<vmem>>, vector<256x128xbf16>,
    } else {
    }
    return
  }
  func.func @transform_0(%arg0: i32, %arg1: i32, %arg2: i32) -> (i32, i32) {
    %c0_i32 = arith.constant 0 : i32
    return %arg0, %arg2 : i32, i32
  }
  func.func @transform_1(%arg0: i32, %arg1: i32, %arg2: i32) -> (i32, i32) {
    %c0_i32 = arith.constant 0 : i32
    return %arg2, %arg1 : i32, i32
  }
  func.func @transform_2(%arg0: i32, %arg1: i32, %arg2: i32) -> (i32, i32) {
    %c0_i32 = arith.constant 0 : i32
    %c0_i32_0 = arith.constant 0 : i32
    return %c0_i32, %arg1 : i32, i32
  }
  func.func @transform_3(%arg0: i32, %arg1: i32, %arg2: i32) -> (i32, i32) {
    %c0_i32 = arith.constant 0 : i32
    return %arg0, %arg1 : i32, i32
  }
}

</mosaic_0001>

<bundles_post_ra>
// kernel: tpu_custom_call.1
= control target key start
LH: loop header
LB: loop body
LE: loop exit
PB: predicated region body
PF: predicated region fallthrough
CT: control target
= control target key end

     0   :  { %8 = vsyncpa [#allocation4], 0  ;;  %s2074_s0 = inlined_call_operand.hbm [shape: bf16[2048,128], index: 0, kind: input, shape index: {}]   ;;  %s2075_s1 = inlined_call_operand.hbm [shape: bf16[128,128], index: 1, kind: input, shape index: {}]   ;;  %s2076_s2 = inlined_call_operand.vmem [shape: f32[1,128], index: 2, kind: input, shape index: {}]   ;;  %s2077_s3 = inlined_call_operand.hbm [shape: bf16[2048,128], index: 3, kind: output, shape index: {}]  }
   0x1   :  { %10 = vsyncpa [#allocation4 + $0x1], 0 }
   0x2   :  { %11 = vsyncpa [#allocation7], 0 }
   0x3   :  { %12 = vsyncpa [#allocation5], 0 }
   0x4   :  { %14 = vsyncpa [#allocation5 + $0x1], 0  ;;  %s1767_s12 = smov 0   ;;  %s1769_s13 = smov 0  }
   0x5   :  { %s1771_s14 = smov 0   ;;  %s1773_s15 = smov 0  }
   0x6   :  { %s1775_s16 = smov 0   ;;  %s1777_s17 = smov 0  }
   0x7 LB: > { %s1201_s18 = sadd.s32 4294967295, %s1738_s17   ;;  %s1202_s19 = sadd.s32 4294967294, %s1738_s17   ;;  %s1738_s17 = sphi %s1777_s17, %s20_s17   ;;  %s1734_s16 = sphi %s1775_s16, %s2100_s16   ;;  %s1730_s15 = sphi %s1773_s15, %s2099_s15   ;;  %s1726_s14 = sphi %s1771_s14, %s2098_s14   ;;  %s1722_s13 = sphi %s1769_s13, %s2097_s13   ;;  %s1718_s12 = sphi %s1767_s12, %s2096_s12  }
   0x8   : > { %p61_p0 = scmp.ne.s32.totalorder %s1722_s13, %s1718_s12  ;;  %p1801_p1 = scmp.eq.s32.totalorder %s1201_s18, 0 }
   0x9   : > { %p1805_p2 = scmp.eq.s32.totalorder %s1201_s18, 7  ;;  %p147_p3 = scmp.eq.s32.totalorder %s1202_s19, 7 }
   0xa   : > { %s2082_s20 = scalar_select %p1801_p1, 1, 0 }
   0xb   : > { %s2083_s21 = scalar_select %p1805_p2, 1, 0 }
   0xc   : > { %p1811_p4 = por %p1801_p1, %p61_p0  ;;  %p1203_p5 = scmp.ge.s32.totalorder %s1738_s17, 1 }
   0xd   : > { %p1816_p6 = por %p147_p3, %p61_p0  ;;  %p154_p7 = scmp.lt.s32.totalorder %s1738_s17, 9 }
   0xe   : > { %s2084_s22 = scalar_select %p1811_p4, 1, 0 }
   0xf   : > { %s2085_s23 = scalar_select %p1816_p6, 1, 0 }
  0x10   : > { %p1821_p8 = pnand %p1203_p5, %p154_p7  ;;  %s1740_s25 = smov [#allocation6]  }
  0x11   : > { %s170_s26 = sshll.u32 %s1740_s25, 4  ;;  %s39_s28 = sadd.s32 1, %s1734_s16  ;;  %s171_s26 = int_to_ptr.vmem [resolvable:$true] %s170_s26 }
  0x12   : > { %s2086_s24 = scalar_select %p1821_p8, 1, 0 }
  0x13   : > { %p1501_p9 = pneg %p1821_p8  ;;  %s1594_s4 = scalar_lea.hbm %s2075_s1, 1024 }
  0x14   : > { %p1595_p11 = scmp.ne.s32.totalorder %s2075_s1, %s1594_s4  ;;  %p1601_p3 = scmp.lt.u32.totalorder %s1594_s4, %s2075_s1 }
  0x15   : > { %p1829_p10 = pnand %p1501_p9, %p1801_p1 }
  0x17   : > { %p1596_p12 = pneg %p1829_p10 }
  0x19   : > { %p1597_p13 = pnand %p1596_p12, %p1595_p11 }
  0x1b   : > { %p1598_p0 = pneg %p1597_p13 }
  0x1d   : > { %p1603_p5 = pnand %p1601_p3, %p1598_p0 }
  0x1f   : > { %1606 = shalt.err (!%p1603_p5)
}
  0x20   : > { %s1607_s9 = scalar_lea.vmem %s171_s26, 1024  ;;  %p1615_p1 = scmp.lt.s32.totalorder %s171_s26, %s171_s26 }
  0x21   : > { %p1608_p7 = scmp.ne.s32.totalorder %s171_s26, %s1607_s9  ;;  %p1616_p4 = scmp.lt.s32.totalorder %s1607_s9, %s1607_s9 }
  0x23   : > { %p1610_p9 = pnand %p1608_p7, %p1596_p12  ;;  %p1617_p8 = por %p1616_p4, %p1615_p1 }
  0x25   : > { %p1611_p6 = pneg %p1610_p9 }
  0x27   : > { %p1618_p2 = pnand %p1617_p8, %p1611_p6 }
  0x29   : > { %1621 = shalt.err (!%p1618_p2)
}
  0x2a   : > { %s1741_s10 = smov 64   ;;  %s1742_s11 = smov 4  }
  0x2b   : > { %1504 = dma.hbm_to_vmem [thread:$0]  (!%p1829_p10), %s2075_s1, 1024, %s171_s26, [#allocation7], %s1741_s10, %s1741_s10, %s1742_s11  }
  0x2c   : > { %p41_p1 = scmp.ge.s32.totalorder %s39_s28, 8  ;;  %s48_s25 = sadd.s32 1, %s1726_s14 }
  0x2d   : > { %p55_p2 = scmp.ne.s32.totalorder %s1726_s14, %s1722_s13  ;;  %p56_p4 = scmp.eq.s32.totalorder %s1738_s17, 0 }
  0x2e   : > { %s2102_s28 = smov (%p41_p1, %s39_s28), 0  ;;  %p2089_p8 = scmp.ne.s32.totalorder %s2083_s21, 0 }
  0x2f   : > { %p1859_p6 = por %p56_p4, %p55_p2  ;;  %s43_s30 = ssub.s32 %s1734_s16, %s2102_s28 }
  0x30   : > { %p1865_p11 = por %p2089_p8, %p55_p2  ;;  %p1514_p12 = scmp.lt.s32.totalorder %s1738_s17, 8 }
  0x31   : > { %p46_p10 = scmp.eq.s32.totalorder %s43_s30, 0  ;;  %s190_s26 = sand.u32 1, %s1726_s14  }
  0x32   : > { %s1207_s4 = sshll.u32 %s190_s26, 7  ;;  %s1276_s6 = sshll.u32 %s1734_s16, 11 }
  0x33   : > { %s1874_s5 = scalar_select %p46_p10, %s1726_s14, %s48_s25  }
  0x34   : > { %s1880_s9 = scalar_lea.hbm %s2074_s0, %s1276_s6  ;;  %s194_s21 = scalar_lea.vmem [#allocation3], %s1207_s4 }
  0x35   : > { %s202_s18 = sshll.u32 %s194_s21, 4  ;;  %p1886_p13 = pnand %p1514_p12, %p1859_p6  ;;  %s1882_s18 = int_to_ptr.vmem [resolvable:$true] %s202_s18 }
  0x36   : > { %s1890_s25 = scalar_lea.sflag [#allocation4], %s190_s26  ;;  %s1622_s30 = scalar_lea.hbm %s1880_s9, 2048 }
  0x37   : > { %p1623_p0 = scmp.ne.s32.totalorder %s1880_s9, %s1622_s30  ;;  %p1624_p3 = pneg %p1886_p13 }
  0x38   : > { %s1627_s29 = scalar_lea.hbm %s2074_s0, 16384  ;;  %p1628_p9 = scmp.lt.u32.totalorder %s1880_s9, %s2074_s0 }
  0x39   : > { %p1625_p5 = pnand %p1624_p3, %p1623_p0  ;;  %p1629_p1 = scmp.lt.u32.totalorder %s1627_s29, %s1622_s30 }
  0x3a   : > { %p1631_p4 = scmp.lt.u32.totalorder %s1622_s30, %s1880_s9 }
  0x3b   : > { %p1626_p7 = pneg %p1625_p5  ;;  %p1630_p2 = por %p1629_p1, %p1628_p9 }
  0x3d   : > { %p1632_p6 = por %p1631_p4, %p1630_p2 }
  0x3f   : > { %p1633_p8 = pnand %p1632_p6, %p1626_p7 }
  0x41   : > { %1636 = shalt.err (!%p1633_p8)
}
  0x42   : > { %s1637_s26 = scalar_lea.vmem %s1882_s18, 2048  ;;  %s1743_s21 = smov [#allocation3]  }
  0x43   : > { %p1638_p12 = scmp.ne.s32.totalorder %s1882_s18, %s1637_s26  ;;  %s1642_s4 = sshll.u32 %s1743_s21, 4  ;;  %s1643_s4 = int_to_ptr.vmem [resolvable:$false] %s1642_s4 }
  0x44   : > { %s1644_s6 = scalar_lea.vmem %s1643_s4, 4096  ;;  %p1645_p5 = scmp.lt.s32.totalorder %s1882_s18, %s1643_s4 }
  0x45   : > { %p1640_p10 = pnand %p1638_p12, %p1624_p3  ;;  %p1646_p9 = scmp.lt.s32.totalorder %s1644_s6, %s1637_s26 }
  0x47   : > { %p1641_p0 = pneg %p1640_p10  ;;  %p1647_p1 = por %p1646_p9, %p1645_p5 }
  0x49   : > { %p1648_p2 = pnand %p1647_p1, %p1641_p0 }
  0x4b   : > { %1651 = shalt.err (!%p1648_p2)
}
  0x4c   : > { %1508 = dma.hbm_to_vmem [thread:$0]  (!%p1886_p13), %s1880_s9, 2048, %s1882_s18, %s1890_s25, %s1741_s10, %s1741_s10, %s1742_s11  }
  0x4d   : > { %p2092_p3 = scmp.ne.s32.totalorder %s2086_s24, 0 }
  0x4e   : > { %s1924_s30 = sand.u32 (!%p2092_p3), 1, %s1722_s13   ;;  %p2093_p7 = scmp.ne.s32.totalorder (!%p2092_p3), %s2084_s22, 0 }
  0x4f   : > { %214 = sbr.rel (%p2092_p3) target bundleno = 392 (0x188), region = 32  ;;  %s1211_s29 = sshll.u32 (!%p2092_p3), %s1924_s30, 7 }
  0x50   : > { %s217_s7 = scalar_lea.sflag (!%p2092_p3), [#allocation4], %s1924_s30  ;;  %s1930_s19 = scalar_lea.vmem (!%p2092_p3), [#allocation3], %s1211_s29 }
  0x56   : > { %1705 = dma.done.wait (%p2093_p7), %s217_s7, 2048  }
  0x57   : > { %1707 = vsyncadd (%p2093_p7), %s217_s7, 4294965248  ;;  %p2094_p13 = scmp.ne.s32.totalorder %s2082_s20, 0 }
  0x59   : > { %1709 = dma.done.wait (%p2094_p13), [#allocation7], 1024  }
  0x5a   : > { %1711 = vsyncadd (%p2094_p13), [#allocation7], 4294966272  ;;  %v1570_v0 = vld [vmem:[#allocation6] sm:$0xff]   ;;  %v1571_v1 = vld [vmem:[#allocation6 + $0x8] sm:$0xff]   ;;  %s1975_s24 = scalar_lea.vmem [#allocation8], %s1211_s29  ;;  %s1309_s10 = sshll.u32 %s1730_s15, 11 }
  0x5b   : > { %1429 = vmatprep.subr.bf16.mxu0 %v1570_v0  ;;  %1477 = vmatprep.subr.bf16.mxu1 %v1570_v0  ;;  %v1572_v2 = vld [vmem:[#allocation6 + $0x10] sm:$0xff]   ;;  %v1573_v3 = vld [vmem:[#allocation6 + $0x18] sm:$0xff]   ;;  %v1578_v4 = vld [vmem:[%s1930_s19] sm:$0xff]   ;;  %s1087_s11 = sshll.u32 %s1975_s24, 4  ;;  %s2023_s25 = scalar_lea.hbm %s2077_s3, %s1309_s10  ;;  %s2025_s11 = int_to_ptr.vmem [resolvable:$true] %s1087_s11 }
  0x5c   : > { %1430 = vmatpush3.bf16.msra.mxu0 %v1570_v0  ;;  %1485 = vmatpush3.bf16.msra.mxu1 %v1570_v0  ;;  %v1579_v5 = vld [vmem:[%s1930_s19 + $0x40] sm:$0xff]   ;;  %v1575_v7 = vld [vmem:[#allocation6 + $0x28] sm:$0xff]   ;;  %v1576_v8 = vld [vmem:[#allocation6 + $0x30] sm:$0xff]   ;;  %s1073_s15 = scalar_lea.sflag [#allocation5], %s1924_s30  ;;  %s1652_s8 = scalar_lea.vmem %s2025_s11, 2048 }
  0x5d   : > { %1431 = vmatprep.subr.bf16.mxu0 %v1571_v1  ;;  %1478 = vmatprep.subr.bf16.mxu1 %v1571_v1  ;;  %v1574_v6 = vld [vmem:[#allocation6 + $0x20] sm:$0xff]   ;;  %v1577_v9 = vld [vmem:[#allocation6 + $0x38] sm:$0xff]   ;;  %v1580_v10 = vld [vmem:[%s1930_s19 + $0x8] sm:$0xff]   ;;  %p1653_p4 = scmp.ne.s32.totalorder %s2025_s11, %s1652_s8  ;;  %s1744_s26 = smov [#allocation8]  }
  0x5e   : > { %1445 = vmatprep.mubr.bf16.mxu0 %v1578_v4  ;;  %1461 = vmatprep.mubr.bf16.mxu1 %v1579_v5  ;;  %v1581_v11 = vld [vmem:[%s1930_s19 + $0x48] sm:$0xff]   ;;  %v1582_v12 = vld [vmem:[%s1930_s19 + $0x10] sm:$0xff]   ;;  %v1584_v14 = vld [vmem:[%s1930_s19 + $0x18] sm:$0xff]   ;;  %s1656_s21 = sshll.u32 %s1744_s26, 4  ;;  %s1657_s21 = int_to_ptr.vmem [resolvable:$false] %s1656_s21 }
  0x5f   : > { %v1583_v13 = vld [vmem:[%s1930_s19 + $0x50] sm:$0xff]   ;;  %v1585_v15 = vld [vmem:[%s1930_s19 + $0x58] sm:$0xff]   ;;  %v1586_v16 = vld [vmem:[%s1930_s19 + $0x20] sm:$0xff]   ;;  %p1654_p6 = pnand %p1653_p4, %p1865_p11  ;;  %s1658_s4 = scalar_lea.vmem %s1657_s21, 4096 }
  0x60   : > { %1432 = vmatpush3.bf16.msra.mxu0 %v1571_v1  ;;  %1486 = vmatpush3.bf16.msra.mxu1 %v1571_v1  ;;  %v1587_v17 = vld [vmem:[%s1930_s19 + $0x60] sm:$0xff]   ;;  %v1588_v18 = vld [vmem:[%s1930_s19 + $0x28] sm:$0xff]   ;;  %v1590_v20 = vld [vmem:[%s1930_s19 + $0x30] sm:$0xff]   ;;  %p1659_p12 = scmp.lt.s32.totalorder %s2025_s11, %s1657_s21  ;;  %p1660_p10 = scmp.lt.s32.totalorder %s1658_s4, %s1652_s8 }
  0x61   : > { %1433 = vmatprep.subr.bf16.mxu0 %v1572_v2  ;;  %1479 = vmatprep.subr.bf16.mxu1 %v1572_v2  ;;  %v1589_v19 = vld [vmem:[%s1930_s19 + $0x68] sm:$0xff]   ;;  %v1591_v21 = vld [vmem:[%s1930_s19 + $0x70] sm:$0xff]   ;;  %v1592_v22 = vld [vmem:[%s1930_s19 + $0x38] sm:$0xff]   ;;  %p1655_p8 = pneg %p1654_p6 }
  0x62   : > { %v1593_v23 = vld [vmem:[%s1930_s19 + $0x78] sm:$0xff]   ;;  %v1959_v24 = vld [vmem:[%s2076_s2] ss:$0 sm:$0xff]  ;;  %p1661_p0 = por %p1660_p10, %p1659_p12 }
  0x64   : > { %1434 = vmatpush3.bf16.msra.mxu0 %v1572_v2  ;;  %1487 = vmatpush3.bf16.msra.mxu1 %v1572_v2  ;;  %p1662_p5 = pnand %p1661_p0, %p1655_p8 }
  0x65   : > { %1435 = vmatprep.subr.bf16.mxu0 %v1573_v3  ;;  %1480 = vmatprep.subr.bf16.mxu1 %v1573_v3 }
  0x68   : > { %1436 = vmatpush3.bf16.msra.mxu0 %v1573_v3  ;;  %1488 = vmatpush3.bf16.msra.mxu1 %v1573_v3 }
  0x69   : > { %1437 = vmatprep.subr.bf16.mxu0 %v1574_v6  ;;  %1481 = vmatprep.subr.bf16.mxu1 %v1574_v6 }
  0x6c   : > { %1438 = vmatpush3.bf16.msra.mxu0 %v1574_v6  ;;  %1489 = vmatpush3.bf16.msra.mxu1 %v1574_v6 }
  0x6d   : > { %1439 = vmatprep.subr.bf16.mxu0 %v1575_v7  ;;  %1482 = vmatprep.subr.bf16.mxu1 %v1575_v7 }
  0x70   : > { %1440 = vmatpush3.bf16.msra.mxu0 %v1575_v7  ;;  %1490 = vmatpush3.bf16.msra.mxu1 %v1575_v7 }
  0x71   : > { %1441 = vmatprep.subr.bf16.mxu0 %v1576_v8  ;;  %1483 = vmatprep.subr.bf16.mxu1 %v1576_v8 }
  0x74   : > { %1442 = vmatpush3.bf16.msra.mxu0 %v1576_v8  ;;  %1491 = vmatpush3.bf16.msra.mxu1 %v1576_v8 }
  0x75   : > { %1443 = vmatprep.subr.bf16.mxu0 %v1577_v9  ;;  %1484 = vmatprep.subr.bf16.mxu1 %v1577_v9 }
  0x78   : > { %1444 = vmatpush3.bf16.msra.mxu0 %v1577_v9  ;;  %1492 = vmatpush3.bf16.msra.mxu1 %v1577_v9 }
  0x7b   : > { %1446 = vmatmul.mubr.bf16.vlgmr.msra.gmra.mrb[0].mxu0 %v1580_v10  ;;  %1462 = vmatmul.mubr.bf16.vlgmr.msra.gmra.mrb[0].mxu1 %v1581_v11 }
  0x7c   : > { %1449 = vmatprep.mubr.bf16.mxu0 %v1582_v12  ;;  %1465 = vmatprep.mubr.bf16.mxu1 %v1583_v13 }
  0x83   : > { %1450 = vmatmul.mubr.bf16.gmra.mrb[4].mxu0 %v1584_v14  ;;  %1466 = vmatmul.mubr.bf16.gmra.mrb[4].mxu1 %v1585_v15 }
  0x84   : > { %1453 = vmatprep.mubr.bf16.mxu0 %v1586_v16  ;;  %1469 = vmatprep.mubr.bf16.mxu1 %v1587_v17 }
  0x8b   : > { %1454 = vmatmul.mubr.bf16.gmra.mrb[8].mxu0 %v1588_v18  ;;  %1470 = vmatmul.mubr.bf16.gmra.mrb[8].mxu1 %v1589_v19 }
  0x8c   : > { %1457 = vmatprep.mubr.bf16.mxu0 %v1590_v20  ;;  %1473 = vmatprep.mubr.bf16.mxu1 %v1591_v21 }
  0x93   : > { %1458 = vmatmul.mubr.bf16.gmra.mrb[12].mxu0 %v1592_v22  ;;  %1474 = vmatmul.mubr.bf16.gmra.mrb[12].mxu1 %v1593_v23 }
 0x14e   : > { %v1447_v25 = vpop.f32.mrb[0].mxu0  ;;  %v1463_v26 = vpop.f32.mrb[0].mxu1 }
 0x14f   : > { %v786_v27 = vadd.f32 %v1447_v25, %v1959_v24  ;;  %v802_v28 = vadd.f32 %v1463_v26, %v1959_v24  ;;  %v551_v29 = vpop.f32.mrb[1].mxu0  ;;  %v615_v30 = vpop.f32.mrb[1].mxu1 }
 0x150   : > { %v784_v31 = vadd.f32 %v1959_v24, %v551_v29  ;;  %v800_v32 = vadd.f32 %v1959_v24, %v615_v30  ;;  %v1448_v33 = vpop.f32.mrb[2].mxu0  ;;  %v1464_v34 = vpop.f32.mrb[2].mxu1 }
 0x151   : > { %vm818_vm0 = vcmp.ge.f32.partialorder %v786_v27, 0.0  ;;  %v850_v35 = vmul.f32 0.01, %v786_v27  ;;  %vm834_vm1 = vcmp.ge.f32.partialorder %v802_v28, 0.0  ;;  %v866_v36 = vmul.f32 0.01, %v802_v28 }
 0x152   : > { %vm816_vm2 = vcmp.ge.f32.partialorder %v784_v31, 0.0  ;;  %v848_v37 = vmul.f32 0.01, %v784_v31  ;;  %vm832_vm3 = vcmp.ge.f32.partialorder %v800_v32, 0.0  ;;  %v864_v38 = vmul.f32 0.01, %v800_v32 }
 0x153   : > { %v787_v39 = vadd.f32 %v1448_v33, %v1959_v24  ;;  %v803_v40 = vadd.f32 %v1464_v34, %v1959_v24  ;;  %v554_v41 = vpop.f32.mrb[3].mxu0  ;;  %v618_v42 = vpop.f32.mrb[3].mxu1  ;;  %v882_v43 = vsel %vm818_vm0, %v786_v27, %v850_v35  ;;  %v898_v44 = vsel %vm834_vm1, %v802_v28, %v866_v36 }
 0x154   : > { %v785_v45 = vadd.f32 %v1959_v24, %v554_v41  ;;  %v801_v46 = vadd.f32 %v1959_v24, %v618_v42  ;;  %v880_v51 = vsel %vm816_vm2, %v784_v31, %v848_v37  ;;  %v896_v52 = vsel %vm832_vm3, %v800_v32, %v864_v38 }
 0x155   : > { %vm819_vm4 = vcmp.ge.f32.partialorder %v787_v39, 0.0  ;;  %v851_v47 = vmul.f32 0.01, %v787_v39  ;;  %vm835_vm5 = vcmp.ge.f32.partialorder %v803_v40, 0.0  ;;  %v867_v48 = vmul.f32 0.01, %v803_v40 }
 0x156   : > { %vm817_vm6 = vcmp.ge.f32.partialorder %v785_v45, 0.0  ;;  %v849_v49 = vmul.f32 0.01, %v785_v45  ;;  %vm833_vm7 = vcmp.ge.f32.partialorder %v801_v46, 0.0  ;;  %v865_v50 = vmul.f32 0.01, %v801_v46 }
 0x157   : > { %v883_v53 = vsel %vm819_vm4, %v787_v39, %v851_v47  ;;  %v899_v54 = vsel %vm835_vm5, %v803_v40, %v867_v48  ;;  %v1451_v55 = vpop.f32.mrb[4].mxu0  ;;  %v1467_v56 = vpop.f32.mrb[4].mxu1 }
 0x158   : > { %v1318_v57 = vpack.c.bf16 %v883_v53, %v882_v43  ;;  %v1358_v58 = vpack.c.bf16 %v899_v54, %v898_v44  ;;  %v881_v59 = vsel %vm817_vm6, %v785_v45, %v849_v49  ;;  %v897_v60 = vsel %vm833_vm7, %v801_v46, %v865_v50  ;;  %v567_v61 = vpop.f32.mrb[5].mxu0  ;;  %v631_v62 = vpop.f32.mrb[5].mxu1 }
 0x159   : > { %v1313_v63 = vpack.c.bf16 %v881_v59, %v880_v51  ;;  %v1353_v0 = vpack.c.bf16 %v897_v60, %v896_v52  ;;  %v790_v1 = vadd.f32 %v1451_v55, %v1959_v24  ;;  %v806_v2 = vadd.f32 %v1467_v56, %v1959_v24  ;;  %v1452_v3 = vpop.f32.mrb[6].mxu0  ;;  %v1468_v4 = vpop.f32.mrb[6].mxu1 }
 0x15a   : > { %1390 = vst [vmem:[%s1975_s24 + $0x8] sm:$0xff] %v1318_v57   ;;  %1398 = vst [vmem:[%s1975_s24 + $0x48] sm:$0xff] %v1358_v58   ;;  %v788_v5 = vadd.f32 %v1959_v24, %v567_v61  ;;  %v804_v6 = vadd.f32 %v1959_v24, %v631_v62  ;;  %v791_v7 = vadd.f32 %v1452_v3, %v1959_v24  ;;  %v570_v9 = vpop.f32.mrb[7].mxu0  ;;  %v634_v10 = vpop.f32.mrb[7].mxu1 }
 0x15b   : > { %v807_v8 = vadd.f32 %v1468_v4, %v1959_v24  ;;  %1314 = vst [vmem:[%s1975_s24] sm:$0xff] %v1313_v63   ;;  %1397 = vst [vmem:[%s1975_s24 + $0x40] sm:$0xff] %v1353_v0   ;;  %vm822_vm8 = vcmp.ge.f32.partialorder %v790_v1, 0.0  ;;  %v854_v11 = vmul.f32 0.01, %v790_v1  ;;  %vm838_vm9 = vcmp.ge.f32.partialorder %v806_v2, 0.0 }
 0x15c   : > { %v870_v12 = vmul.f32 0.01, %v806_v2  ;;  %vm820_vm10 = vcmp.ge.f32.partialorder %v788_v5, 0.0  ;;  %v852_v13 = vmul.f32 0.01, %v788_v5  ;;  %vm836_vm11 = vcmp.ge.f32.partialorder %v804_v6, 0.0 }
 0x15d   : > { %v886_v14 = vsel %vm822_vm8, %v790_v1, %v854_v11  ;;  %v868_v15 = vmul.f32 0.01, %v804_v6  ;;  %vm823_vm12 = vcmp.ge.f32.partialorder %v791_v7, 0.0  ;;  %v855_v16 = vmul.f32 0.01, %v791_v7 }
 0x15e   : > { %v902_v17 = vsel %vm838_vm9, %v806_v2, %v870_v12  ;;  %v884_v18 = vsel %vm820_vm10, %v788_v5, %v852_v13  ;;  %vm839_vm13 = vcmp.ge.f32.partialorder %v807_v8, 0.0  ;;  %v871_v19 = vmul.f32 0.01, %v807_v8  ;;  %v1455_v20 = vpop.f32.mrb[8].mxu0  ;;  %v1471_v21 = vpop.f32.mrb[8].mxu1 }
 0x15f   : > { %v887_v22 = vsel %vm823_vm12, %v791_v7, %v855_v16  ;;  %v789_v23 = vadd.f32 %v1959_v24, %v570_v9  ;;  %v805_v25 = vadd.f32 %v1959_v24, %v634_v10  ;;  %v794_v26 = vadd.f32 %v1455_v20, %v1959_v24  ;;  %v583_v27 = vpop.f32.mrb[9].mxu0  ;;  %v647_v28 = vpop.f32.mrb[9].mxu1 }
 0x160   : > { %v1328_v29 = vpack.c.bf16 %v887_v22, %v886_v14  ;;  %v903_v30 = vsel %vm839_vm13, %v807_v8, %v871_v19  ;;  %v810_v31 = vadd.f32 %v1471_v21, %v1959_v24  ;;  %v792_v32 = vadd.f32 %v1959_v24, %v583_v27  ;;  %v1456_v33 = vpop.f32.mrb[10].mxu0  ;;  %v1472_v34 = vpop.f32.mrb[10].mxu1 }
 0x161   : > { %v1368_v35 = vpack.c.bf16 %v903_v30, %v902_v17  ;;  %vm821_vm14 = vcmp.ge.f32.partialorder %v789_v23, 0.0  ;;  %v853_v36 = vmul.f32 0.01, %v789_v23  ;;  %vm837_vm15 = vcmp.ge.f32.partialorder %v805_v25, 0.0  ;;  %v586_v37 = vpop.f32.mrb[11].mxu0  ;;  %v650_v38 = vpop.f32.mrb[11].mxu1 }
 0x162   : > { %1392 = vst [vmem:[%s1975_s24 + $0x18] sm:$0xff] %v1328_v29   ;;  %v869_v39 = vmul.f32 0.01, %v805_v25  ;;  %vm826_vm0 = vcmp.ge.f32.partialorder %v794_v26, 0.0  ;;  %v858_v40 = vmul.f32 0.01, %v794_v26  ;;  %v900_v41 = vsel %vm836_vm11, %v804_v6, %v868_v15 }
 0x163   : > { %vm842_vm1 = vcmp.ge.f32.partialorder %v810_v31, 0.0  ;;  %1400 = vst [vmem:[%s1975_s24 + $0x58] sm:$0xff] %v1368_v35   ;;  %v885_v42 = vsel %vm821_vm14, %v789_v23, %v853_v36  ;;  %v874_v43 = vmul.f32 0.01, %v810_v31  ;;  %vm824_vm2 = vcmp.ge.f32.partialorder %v792_v32, 0.0 }
 0x164   : > { %v1323_v44 = vpack.c.bf16 %v885_v42, %v884_v18  ;;  %v901_v45 = vsel %vm837_vm15, %v805_v25, %v869_v39  ;;  %v856_v46 = vmul.f32 0.01, %v792_v32  ;;  %v808_v47 = vadd.f32 %v1959_v24, %v647_v28 }
 0x165   : > { %v1363_v48 = vpack.c.bf16 %v901_v45, %v900_v41  ;;  %v890_v49 = vsel %vm826_vm0, %v794_v26, %v858_v40  ;;  %v906_v50 = vsel %vm842_vm1, %v810_v31, %v874_v43  ;;  %v795_v51 = vadd.f32 %v1456_v33, %v1959_v24 }
 0x166   : > { %1391 = vst [vmem:[%s1975_s24 + $0x10] sm:$0xff] %v1323_v44   ;;  %vm840_vm3 = vcmp.ge.f32.partialorder %v808_v47, 0.0  ;;  %v872_v52 = vmul.f32 0.01, %v808_v47  ;;  %v811_v53 = vadd.f32 %v1472_v34, %v1959_v24  ;;  %v793_v54 = vadd.f32 %v1959_v24, %v586_v37  ;;  %v1459_v55 = vpop.f32.mrb[12].mxu0  ;;  %v1475_v56 = vpop.f32.mrb[12].mxu1 }
 0x167   : > { %1399 = vst [vmem:[%s1975_s24 + $0x50] sm:$0xff] %v1363_v48   ;;  %vm827_vm4 = vcmp.ge.f32.partialorder %v795_v51, 0.0  ;;  %v859_v57 = vmul.f32 0.01, %v795_v51  ;;  %v809_v58 = vadd.f32 %v1959_v24, %v650_v38  ;;  %v798_v59 = vadd.f32 %v1459_v55, %v1959_v24  ;;  %v599_v60 = vpop.f32.mrb[13].mxu0  ;;  %v663_v61 = vpop.f32.mrb[13].mxu1 }
 0x168   : > { %v888_v62 = vsel %vm824_vm2, %v792_v32, %v856_v46  ;;  %vm843_vm5 = vcmp.ge.f32.partialorder %v811_v53, 0.0  ;;  %v875_v63 = vmul.f32 0.01, %v811_v53  ;;  %vm825_vm6 = vcmp.ge.f32.partialorder %v793_v54, 0.0  ;;  %v1460_v0 = vpop.f32.mrb[14].mxu0  ;;  %v1476_v1 = vpop.f32.mrb[14].mxu1 }
 0x169   : > { %v891_v2 = vsel %vm827_vm4, %v795_v51, %v859_v57  ;;  %v857_v3 = vmul.f32 0.01, %v793_v54  ;;  %vm841_vm7 = vcmp.ge.f32.partialorder %v809_v58, 0.0  ;;  %v873_v4 = vmul.f32 0.01, %v809_v58  ;;  %v602_v5 = vpop.f32.mrb[15].mxu0 }
 0x16a   : > { %v904_v6 = vsel %vm840_vm3, %v808_v47, %v872_v52  ;;  %v1338_v7 = vpack.c.bf16 %v891_v2, %v890_v49  ;;  %v907_v8 = vsel %vm843_vm5, %v811_v53, %v875_v63  ;;  %v862_v9 = vmul.f32 0.01, %v798_v59  ;;  %v666_v10 = vpop.f32.mrb[15].mxu1 }
 0x16b   : > { %v1378_v11 = vpack.c.bf16 %v907_v8, %v906_v50  ;;  %v889_v12 = vsel %vm825_vm6, %v793_v54, %v857_v3  ;;  %v905_v13 = vsel %vm841_vm7, %v809_v58, %v873_v4  ;;  %v814_v14 = vadd.f32 %v1475_v56, %v1959_v24 }
 0x16c   : > { %1394 = vst [vmem:[%s1975_s24 + $0x28] sm:$0xff] %v1338_v7   ;;  %v1333_v15 = vpack.c.bf16 %v889_v12, %v888_v62  ;;  %v1373_v16 = vpack.c.bf16 %v905_v13, %v904_v6  ;;  %vm830_vm8 = vcmp.ge.f32.partialorder %v798_v59, 0.0  ;;  %v796_v17 = vadd.f32 %v1959_v24, %v599_v60 }
 0x16d   : > { %1402 = vst [vmem:[%s1975_s24 + $0x68] sm:$0xff] %v1378_v11   ;;  %vm846_vm9 = vcmp.ge.f32.partialorder %v814_v14, 0.0  ;;  %v878_v18 = vmul.f32 0.01, %v814_v14  ;;  %v812_v19 = vadd.f32 %v1959_v24, %v663_v61  ;;  %v799_v20 = vadd.f32 %v1460_v0, %v1959_v24 }
 0x16e   : > { %1393 = vst [vmem:[%s1975_s24 + $0x20] sm:$0xff] %v1333_v15   ;;  %1401 = vst [vmem:[%s1975_s24 + $0x60] sm:$0xff] %v1373_v16   ;;  %v860_v21 = vmul.f32 0.01, %v796_v17  ;;  %v815_v22 = vadd.f32 %v1476_v1, %v1959_v24  ;;  %v797_v23 = vadd.f32 %v1959_v24, %v602_v5  ;;  %v894_v25 = vsel %vm830_vm8, %v798_v59, %v862_v9 }
 0x16f   : > { %vm828_vm10 = vcmp.ge.f32.partialorder %v796_v17, 0.0  ;;  %vm831_vm11 = vcmp.ge.f32.partialorder %v799_v20, 0.0  ;;  %v910_v26 = vsel %vm846_vm9, %v814_v14, %v878_v18  ;;  %v863_v27 = vmul.f32 0.01, %v799_v20 }
 0x170   : > { %vm847_vm12 = vcmp.ge.f32.partialorder %v815_v22, 0.0  ;;  %v879_v28 = vmul.f32 0.01, %v815_v22  ;;  %vm844_vm13 = vcmp.ge.f32.partialorder %v812_v19, 0.0  ;;  %vm829_vm14 = vcmp.ge.f32.partialorder %v797_v23, 0.0 }
 0x171   : > { %v861_v29 = vmul.f32 0.01, %v797_v23  ;;  %v813_v30 = vadd.f32 %v1959_v24, %v666_v10  ;;  %v892_v31 = vsel %vm828_vm10, %v796_v17, %v860_v21  ;;  %v876_v32 = vmul.f32 0.01, %v812_v19 }
 0x172   : > { %v895_v33 = vsel %vm831_vm11, %v799_v20, %v863_v27  ;;  %v911_v34 = vsel %vm847_vm12, %v815_v22, %v879_v28 }
 0x173   : > { %v1348_v35 = vpack.c.bf16 %v895_v33, %v894_v25  ;;  %v1388_v36 = vpack.c.bf16 %v911_v34, %v910_v26  ;;  %v893_v37 = vsel %vm829_vm14, %v797_v23, %v861_v29  ;;  %vm845_vm15 = vcmp.ge.f32.partialorder %v813_v30, 0.0 }
 0x174   : > { %v1343_v38 = vpack.c.bf16 %v893_v37, %v892_v31  ;;  %v877_v39 = vmul.f32 0.01, %v813_v30  ;;  %v908_v24 = vsel %vm844_vm13, %v812_v19, %v876_v32 }
 0x175   : > { %1396 = vst [vmem:[%s1975_s24 + $0x38] sm:$0xff] %v1348_v35   ;;  %1404 = vst [vmem:[%s1975_s24 + $0x78] sm:$0xff] %v1388_v36  }
 0x176   : > { %1395 = vst [vmem:[%s1975_s24 + $0x30] sm:$0xff] %v1343_v38   ;;  %v909_v40 = vsel %vm845_vm15, %v813_v30, %v877_v39 }
 0x177   : > { %v1383_v41 = vpack.c.bf16 %v909_v40, %v908_v24 }
 0x179   : > { %1403 = vst [vmem:[%s1975_s24 + $0x70] sm:$0xff] %v1383_v41  }
 0x17a   : > { %1665 = shalt.err (!%p1662_p5)
}
 0x17b   : > { %s1666_s6 = scalar_lea.hbm %s2023_s25, 2048  ;;  %s1670_s19 = scalar_lea.hbm %s2077_s3, 16384 }
 0x17c   : > { %p1667_p9 = scmp.ne.s32.totalorder %s2023_s25, %s1666_s6  ;;  %p1671_p3 = scmp.lt.u32.totalorder %s2023_s25, %s2077_s3 }
 0x17d   : > { %p1672_p7 = scmp.lt.u32.totalorder %s1670_s19, %s1666_s6  ;;  %p1674_p4 = scmp.lt.u32.totalorder %s1666_s6, %s2023_s25 }
 0x17e   : > { %p1668_p1 = pnand %p1667_p9, %p1865_p11 }
 0x17f   : > { %p1673_p13 = por %p1672_p7, %p1671_p3 }
 0x180   : > { %p1669_p2 = pneg %p1668_p1 }
 0x181   : > { %p1675_p6 = por %p1674_p4, %p1673_p13 }
 0x183   : > { %p1676_p8 = pnand %p1675_p6, %p1669_p2 }
 0x185   : > { %1679 = shalt.err (!%p1676_p8)
}
 0x186   : > { %s1745_s24 = smov 64   ;;  %s1746_s10 = smov 4  }
 0x187   : > { %1499 = dma.vmem_to_hbm [thread:$0]  (%p1865_p11), %s2025_s11, 2048, %s2023_s25, %s1073_s15, %s1745_s24, %s1745_s24, %s1746_s10  }
 0x188 PF: > { %p1516_p12 = scmp.ge.s32.totalorder %s1738_s17, 2  ;;  %s1102_s9 = sand.u32 1, %s1718_s12  }
 0x189   : > { %p2095_p10 = scmp.ne.s32.totalorder %s2085_s23, 0  ;;  %s1103_s18 = scalar_lea.sflag [#allocation5], %s1102_s9 }
 0x18b   : > { %p1510_p0 = pnand %p1516_p12, %p2095_p10 }
 0x18d   : > { %1713 = dma.done.wait (!%p1510_p0), %s1103_s18, 2048  }
 0x18e   : > { %1715 = vsyncadd (!%p1510_p0), %s1103_s18, 4294965248  ;;  %s20_s17 = sadd.s32 1, %s1738_s17   ;;  %s2096_s12 = smov %s1722_s13 }
 0x18f   : > { %p17_p5 = scmp.ge.s32.totalorder %s20_s17, 10   ;;  %s2097_s13 = smov %s1726_s14 }
 0x190   : > { %s2098_s14 = smov %s1874_s5  ;;  %s2099_s15 = smov %s1734_s16 }
 0x191   : > { %s2100_s16 = smov %s2102_s28  ;;  %19 = sbr.rel (!%p17_p5) target bundleno = 7 (0x7), region = 93 }
 0x198   :  { %1108 = vsyncpa [#allocation4], 1 }
 0x199   :  { %1110 = vsyncpa [#allocation4 + $0x1], 1 }
 0x19a   :  { %1111 = vsyncpa [#allocation7], 1 }
 0x19b   :  { %1112 = vsyncpa [#allocation5], 1 }
 0x19c   :  { %1114 = vsyncpa [#allocation5 + $0x1], 1 }

</bundles_post_ra>
